<compile_context>
chip_gen: v5e
topology: v5e:2x2
jax: 0.10.0
libtpu: 0.0.40
codegen_flags: <defaults>
</compile_context>

<pallas_src>
import jax
import jax.numpy as jnp
from jax.experimental import pallas as pl
from jax.experimental.pallas import tpu as pltpu


# ----------------------------------------------------------------------------
# Kernels
# ----------------------------------------------------------------------------

def _mlp_head(q, w1_ref, b1_ref, w2_ref, b2_ref, out_ref):
    """fine_tune = Linear(H,128) -> ReLU -> Linear(128, n_pad), lane-padded out."""
    h1 = jnp.dot(q, w1_ref[...], preferred_element_type=jnp.float32) + b1_ref[...]
    h1 = jnp.maximum(h1, 0.0)
    out = jnp.dot(h1.astype(w2_ref.dtype), w2_ref[...],
                  preferred_element_type=jnp.float32) + b2_ref[...]
    out_ref[...] = out.astype(out_ref.dtype)


def _cls_kernel(pooler_ref, w1_ref, b1_ref, w2_ref, b2_ref, out_ref):
    # 'cls' mode: only the pooler output is read (no [B,S,H] hidden DMA).
    # Feed the MXU in the pooler's native dtype; f32 accumulation comes from
    # preferred_element_type inside _mlp_head.
    _mlp_head(pooler_ref[...], w1_ref, b1_ref, w2_ref, b2_ref, out_ref)


def _weighted_mean_kernel(hidden_ref, wpool_ref, w1_ref, b1_ref, w2_ref, b2_ref,
                          out_ref, acc_ref):
    s = pl.program_id(1)

    @pl.when(s == 0)
    def _():
        acc_ref[...] = jnp.zeros_like(acc_ref)

    # Weighted pooled sum as a batched MXU contraction (bf16-native when hidden
    # is bf16, f32 accumulation).  wpool already carries 1/S or mask/mask.sum(),
    # so no separate denominator input and no finalize scale are needed.
    part = jnp.einsum("bqs,bsh->bqh", wpool_ref[...], hidden_ref[...],
                      preferred_element_type=jnp.float32)         # [tb, 1, H]
    acc_ref[...] += part[:, 0, :]                                  # [tb, H]

    @pl.when(s == pl.num_programs(1) - 1)
    def _():
        _mlp_head(acc_ref[...], w1_ref, b1_ref, w2_ref, b2_ref, out_ref)


# ----------------------------------------------------------------------------
# Tiling helpers
# ----------------------------------------------------------------------------

def _pick_batch_tile(dim, target):
    """Largest divisor of `dim` that is a multiple of 8 and <= target; else the
    full dim (full-dim blocks are always layout-legal)."""
    for t in range(min(target, dim), 7, -1):
        if dim % t == 0 and t % 8 == 0:
            return t
    return dim


def _pick_seq_tile(dim, target):
    """Largest divisor of `dim` that is a multiple of 128 (lane-dense for the
    pooling-weight tile and 16-aligned for bf16 sublane packing) and <= target;
    else the full dim."""
    for t in range(min(target, dim), 127, -1):
        if dim % t == 0 and t % 128 == 0:
            return t
    # TODO(synk): very long non-128-divisible sequences fall back to a full-S
    # tile; pad S in the caller if that blows the VMEM budget (notably on v7x).
    return dim


# ----------------------------------------------------------------------------
# Wrapper
# ----------------------------------------------------------------------------

def bert_sim_forward(hidden, attention_mask, pooler, params, *, mode,
                     block_b=8, block_s=256, cls_block_b=256):
    """hidden: [B,S,H] (f32 or bf16), attention_mask: [B,S], pooler: [B,H]."""
    B, S, H = hidden.shape
    w1, b1, w2, b2 = params["w1"], params["b1"], params["w2"], params["b2"]
    hid = w1.shape[1]
    n_out = w2.shape[1]
    n_pad = max(128, ((n_out + 127) // 128) * 128)

    # Lane-pad the tiny final Linear so the output store is lane-dense.
    w2p = jnp.zeros((hid, n_pad), w2.dtype).at[:, :n_out].set(w2)
    b2p = jnp.zeros((1, n_pad), b2.dtype).at[:, :n_out].set(b2)

    w_itemsize = jnp.dtype(w1.dtype).itemsize
    # weights stay resident (constant index maps); account for sublane padding
    # of the (1, *) bias rows.
    weight_bytes = (H * hid + 8 * hid + hid * n_pad + 8 * n_pad) * w_itemsize
    head_flops = 2 * B * (H * hid + hid * n_pad)

    if mode == "cls":
        # Large batch tile: fills the MXU M-dimension and cuts grid-step count
        # (vs tb=8) by up to 32x for large batches.
        tb = _pick_batch_tile(B, cls_block_b)
        p_itemsize = jnp.dtype(pooler.dtype).itemsize
        tiles = (max(tb, 8) * H * p_itemsize + weight_bytes
                 + max(tb, 8) * n_pad * 4)
        vmem_limit = int(2 * tiles + (8 << 20))
        cost = pl.CostEstimate(
            flops=head_flops, transcendentals=0,
            bytes_accessed=B * H * p_itemsize + weight_bytes + B * n_pad * 4)
        out = pl.pallas_call(
            _cls_kernel,
            out_shape=jax.ShapeDtypeStruct((B, n_pad), jnp.float32),
            grid=(B // tb,),
            in_specs=[
                pl.BlockSpec((tb, H), lambda b: (b, 0)),        # pooler
                pl.BlockSpec((H, hid), lambda b: (0, 0)),       # w1 (resident)
                pl.BlockSpec((1, hid), lambda b: (0, 0)),       # b1
                pl.BlockSpec((hid, n_pad), lambda b: (0, 0)),   # w2 (padded)
                pl.BlockSpec((1, n_pad), lambda b: (0, 0)),     # b2 (padded)
            ],
            out_specs=pl.BlockSpec((tb, n_pad), lambda b: (b, 0)),
            compiler_params=pltpu.CompilerParams(
                dimension_semantics=("parallel",),
                vmem_limit_bytes=vmem_limit),
            cost_estimate=cost,
        )(pooler, w1, b1, w2p, b2p)
        return out[:, :n_out]

    if mode not in ("hidden_mean", "hidden_mean_mask"):
        raise ValueError(f"unexpected mode: {mode}")

    # ---- mean modes: (batch "parallel", seq "arbitrary") reduction grid ----
    # Pooling weights folded into a single lane-dense [B,1,S] tensor:
    #   hidden_mean      -> 1/S everywhere
    #   hidden_mean_mask -> mask / mask.sum(1)  (all-zero mask rows give
    #                       inf/NaN, matching the PyTorch reference semantics)
    if mode == "hidden_mean":
        wpool = jnp.full((B, 1, S), 1.0 / S, dtype=hidden.dtype)
    else:
        mask_f = attention_mask.astype(jnp.float32)
        wpool = (mask_f / mask_f.sum(axis=1, keepdims=True))[:, None, :]
        wpool = wpool.astype(hidden.dtype)

    tb = _pick_batch_tile(B, block_b)
    ts = _pick_seq_tile(S, block_s)
    grid = (B // tb, S // ts)

    h_itemsize = jnp.dtype(hidden.dtype).itemsize
    tiles = (tb * ts * H * h_itemsize          # hidden tile
             + tb * 8 * ts * h_itemsize        # wpool tile (sublane-padded 1->8)
             + weight_bytes
             + max(tb, 8) * n_pad * 4)         # output tile
    vmem_limit = int(2 * tiles + tb * H * 4 + (8 << 20))
    cost = pl.CostEstimate(
        flops=2 * B * S * H + head_flops, transcendentals=0,
        bytes_accessed=(B * S * H + B * S) * h_itemsize
                       + weight_bytes + B * n_pad * 4)

    out = pl.pallas_call(
        _weighted_mean_kernel,
        out_shape=jax.ShapeDtypeStruct((B, n_pad), jnp.float32),
        grid=grid,
        in_specs=[
            pl.BlockSpec((tb, ts, H), lambda b, s: (b, s, 0)),   # hidden
            pl.BlockSpec((tb, 1, ts), lambda b, s: (b, 0, s)),   # pooling weights
            pl.BlockSpec((H, hid), lambda b, s: (0, 0)),         # w1 (resident)
            pl.BlockSpec((1, hid), lambda b, s: (0, 0)),         # b1
            pl.BlockSpec((hid, n_pad), lambda b, s: (0, 0)),     # w2 (padded)
            pl.BlockSpec((1, n_pad), lambda b, s: (0, 0)),       # b2 (padded)
        ],
        out_specs=pl.BlockSpec((tb, n_pad), lambda b, s: (b, 0)),
        scratch_shapes=[pltpu.VMEM((tb, H), jnp.float32)],
        compiler_params=pltpu.CompilerParams(
            dimension_semantics=("parallel", "arbitrary"),
            vmem_limit_bytes=vmem_limit),
        cost_estimate=cost,
    )(hidden, wpool, w1, b1, w2p, b2p)
    return out[:, :n_out]


# ----------------------------------------------------------------------------
# Reference (pure JAX) and test
# ----------------------------------------------------------------------------

def _reference(hidden, attention_mask, pooler, params, *, mode):
    if mode == "cls":
        q = pooler
    elif mode == "hidden_mean":
        q = jnp.mean(hidden.astype(jnp.float32), axis=1)
    else:  # hidden_mean_mask
        m = attention_mask[:, :, None].astype(jnp.float32)
        q = (m * hidden.astype(jnp.float32)).sum(1) / m.sum(1)
    h1 = jnp.maximum(q @ params["w1"] + params["b1"], 0.0)
    return h1 @ params["w2"] + params["b2"]


if __name__ == "__main__":
    B, S, H = 2, 8, 32  # small shapes consistent with the module's forward

    key = jax.random.PRNGKey(0)
    k_hidden, k_pool, k_w1, k_w2 = jax.random.split(key, 4)

    # "BERT outputs" (synthetic, deterministic)
    hidden = jax.random.normal(k_hidden, (B, S, H), dtype=jnp.float32)
    pooler = jax.random.normal(k_pool, (B, H), dtype=jnp.float32)
    # attention mask: first sequence fully valid, second has padding at the end
    attention_mask = jnp.array(
        [[1.0] * S,
         [1.0] * (S - 3) + [0.0] * 3],
        dtype=jnp.float32,
    )

    # fine_tune head parameters (deterministic init, shapes from __init_layers)
    params = {
        "w1": jax.random.normal(k_w1, (H, 128), dtype=jnp.float32) * 0.05,
        "b1": jnp.zeros((1, 128), dtype=jnp.float32),
        "w2": jax.random.normal(k_w2, (128, 2), dtype=jnp.float32) * 0.05,
        "b2": jnp.zeros((1, 2), dtype=jnp.float32),
    }

    ok = True
    for mode in ("cls", "hidden_mean", "hidden_mean_mask"):
        out = bert_sim_forward(hidden, attention_mask, pooler, params, mode=mode)
        out = jax.block_until_ready(out)
        ref = _reference(hidden, attention_mask, pooler, params, mode=mode)
        if out.shape != (B, 2):
            ok = False
        if not jnp.allclose(out, ref, atol=1e-4, rtol=1e-4):
            ok = False

    if ok:
        print("KERNEL_OK")
</pallas_src>

<mosaic_0001>
module attributes {stable_mosaic.version = 11 : i64} {
  func.func @_cls_kernel(%arg0: i32, %arg1: memref<2x32xf32, #tpu.memory_space<vmem>>, %arg2: memref<32x128xf32, #tpu.memory_space<vmem>>, %arg3: memref<1x128xf32, #tpu.memory_space<vmem>>, %arg4: memref<128x128xf32, #tpu.memory_space<vmem>>, %arg5: memref<1x128xf32, #tpu.memory_space<vmem>>, %arg6: memref<2x128xf32, #tpu.memory_space<vmem>>) attributes {dimension_semantics = [#tpu.dimension_semantics<parallel>], iteration_bounds = array<i64: 1>, scalar_prefetch = 0 : i64, scratch_operands = 0 : i64, tpu.core_type = #tpu.core_type<tc>, window_params = [{transform_indices = @transform_0, window_bounds = array<i64: 2, 32>}, {pipeline_mode = #tpu.pipeline_mode<synchronous>, transform_indices = @transform_1, window_bounds = array<i64: 32, 128>}, {pipeline_mode = #tpu.pipeline_mode<synchronous>, transform_indices = @transform_2, window_bounds = array<i64: 1, 128>}, {pipeline_mode = #tpu.pipeline_mode<synchronous>, transform_indices = @transform_3, window_bounds = array<i64: 128, 128>}, {pipeline_mode = #tpu.pipeline_mode<synchronous>, transform_indices = @transform_4, window_bounds = array<i64: 1, 128>}, {transform_indices = @transform_5, window_bounds = array<i64: 2, 128>}]} {
    %c0 = arith.constant 0 : index
    %c0_0 = arith.constant 0 : index
    %0 = vector.load %arg1[%c0, %c0_0] : memref<2x32xf32, #tpu.memory_space<vmem>>, vector<2x32xf32>
    %c0_1 = arith.constant 0 : index
    %c0_2 = arith.constant 0 : index
    %1 = vector.load %arg2[%c0_1, %c0_2] : memref<32x128xf32, #tpu.memory_space<vmem>>, vector<32x128xf32>
    %cst = arith.constant dense<0.000000e+00> : vector<2x128xf32>
    %2 = tpu.matmul %0, %1, %cst {dimension_numbers = #tpu.dot_dimension_numbers<[1], [0], [0], [1], [0, 0, 1, 1], [], []>} : vector<2x32xf32>, vector<32x128xf32>, vector<2x128xf32> -> vector<2x128xf32>
    %c0_3 = arith.constant 0 : index
    %c0_4 = arith.constant 0 : index
    %3 = vector.load %arg3[%c0_3, %c0_4] : memref<1x128xf32, #tpu.memory_space<vmem>>, vector<1x128xf32>
    %4 = vector.broadcast %3 : vector<1x128xf32> to vector<2x128xf32>
    %5 = arith.addf %2, %4 : vector<2x128xf32>
    %cst_5 = arith.constant 0.000000e+00 : f32
    %6 = vector.broadcast %cst_5 : f32 to vector<2x128xf32>
    %7 = arith.maximumf %5, %6 : vector<2x128xf32>
    %c0_6 = arith.constant 0 : index
    %c0_7 = arith.constant 0 : index
    %8 = vector.load %arg4[%c0_6, %c0_7] : memref<128x128xf32, #tpu.memory_space<vmem>>, vector<128x128xf32>
    %cst_8 = arith.constant dense<0.000000e+00> : vector<2x128xf32>
    %9 = tpu.matmul %7, %8, %cst_8 {dimension_numbers = #tpu.dot_dimension_numbers<[1], [0], [0], [1], [0, 0, 1, 1], [], []>} : vector<2x128xf32>, vector<128x128xf32>, vector<2x128xf32> -> vector<2x128xf32>
    %c0_9 = arith.constant 0 : index
    %c0_10 = arith.constant 0 : index
    %10 = vector.load %arg5[%c0_9, %c0_10] : memref<1x128xf32, #tpu.memory_space<vmem>>, vector<1x128xf32>
    %11 = vector.broadcast %10 : vector<1x128xf32> to vector<2x128xf32>
    %12 = arith.addf %9, %11 : vector<2x128xf32>
    %c0_11 = arith.constant 0 : index
    %c0_12 = arith.constant 0 : index
    %13 = vector.load %arg6[%c0_11, %c0_12] : memref<2x128xf32, #tpu.memory_space<vmem>>, vector<2x128xf32>
    tpu.vector_store %arg6[%c0_11, %c0_12], %12 {strides = array<i32>} : memref<2x128xf32, #tpu.memory_space<vmem>>, vector<2x128xf32>,
    return
  }
  func.func @transform_0(%arg0: i32) -> (i32, i32) {
    %c0_i32 = arith.constant 0 : i32
    %c0_i32_0 = arith.constant 0 : i32
    return %arg0, %c0_i32 : i32, i32
  }
  func.func @transform_1(%arg0: i32) -> (i32, i32) {
    %c0_i32 = arith.constant 0 : i32
    %c0_i32_0 = arith.constant 0 : i32
    %c0_i32_1 = arith.constant 0 : i32
    return %c0_i32, %c0_i32_0 : i32, i32
  }
  func.func @transform_2(%arg0: i32) -> (i32, i32) {
    %c0_i32 = arith.constant 0 : i32
    %c0_i32_0 = arith.constant 0 : i32
    %c0_i32_1 = arith.constant 0 : i32
    return %c0_i32, %c0_i32_0 : i32, i32
  }
  func.func @transform_3(%arg0: i32) -> (i32, i32) {
    %c0_i32 = arith.constant 0 : i32
    %c0_i32_0 = arith.constant 0 : i32
    %c0_i32_1 = arith.constant 0 : i32
    return %c0_i32, %c0_i32_0 : i32, i32
  }
  func.func @transform_4(%arg0: i32) -> (i32, i32) {
    %c0_i32 = arith.constant 0 : i32
    %c0_i32_0 = arith.constant 0 : i32
    %c0_i32_1 = arith.constant 0 : i32
    return %c0_i32, %c0_i32_0 : i32, i32
  }
  func.func @transform_5(%arg0: i32) -> (i32, i32) {
    %c0_i32 = arith.constant 0 : i32
    %c0_i32_0 = arith.constant 0 : i32
    return %arg0, %c0_i32 : i32, i32
  }
}

</mosaic_0001>

<bundles_post_ra>
// kernel: tpu_custom_call.1
= control target key start
LH: loop header
LB: loop body
LE: loop exit
PB: predicated region body
PF: predicated region fallthrough
CT: control target
= control target key end

     0   :  { %10 = vsyncpa [#allocation3], 0  ;;  %s324_s0 = inlined_call_operand.hbm [shape: f32[2,32], index: 0, kind: input, shape index: {}]   ;;  %s325_s1 = inlined_call_operand.hbm [shape: f32[32,128], index: 1, kind: input, shape index: {}]   ;;  %s326_s2 = inlined_call_operand.vmem [shape: f32[1,128], index: 2, kind: input, shape index: {}]   ;;  %s327_s3 = inlined_call_operand.hbm [shape: f32[128,128], index: 3, kind: input, shape index: {}]   ;;  %s328_s4 = inlined_call_operand.vmem [shape: f32[1,128], index: 4, kind: input, shape index: {}]   ;;  %s329_s5 = inlined_call_operand.hbm [shape: f32[2,128], index: 5, kind: output, shape index: {}]  }
   0x1   :  { %11 = vsyncpa [#allocation6], 0  ;;  %s28_s20 = sshll.u32 %s325_s1, 4  ;;  %s29_s20 = int_to_ptr.hbm [resolvable:$true] %s28_s20 }
   0x2   :  { %12 = vsyncpa [#allocation4], 0  ;;  %s270_s21 = smov [#allocation5]   ;;  %s18_s25 = sshll.u32 %s324_s0, 4  ;;  %s19_s25 = int_to_ptr.hbm [resolvable:$true] %s18_s25 }
   0x3   :  { %s30_s22 = sshll.u32 %s270_s21, 4  ;;  %s271_s26 = smov 128   ;;  %s31_s22 = int_to_ptr.vmem [resolvable:$true] %s30_s22 }
   0x4   :  { %s272_s27 = smov 8   ;;  %s273_s28 = smov [#allocation2]  }
   0x5   :  { %36 = dma.hbm_to_vmem [thread:$0]  %s29_s20, 512, %s31_s22, [#allocation6], %s271_s26, %s271_s26, %s272_s27  }
   0x6   :  { %s20_s29 = sshll.u32 %s273_s28, 4  ;;  %s43_s7 = sshll.u32 %s327_s3, 4  ;;  %s21_s29 = int_to_ptr.vmem [resolvable:$true] %s20_s29  ;;  %s44_s7 = int_to_ptr.hbm [resolvable:$true] %s43_s7 }
   0x7   :  { %23 = dma.hbm_to_vmem [thread:$0]  %s19_s25, 32, %s21_s29, [#allocation3]  }
   0x8   :  { %s274_s1 = smov [#allocation7]  }
   0x9   :  { %s45_s8 = sshll.u32 %s274_s1, 4  ;;  %s46_s8 = int_to_ptr.vmem [resolvable:$true] %s45_s8 }
   0xa   :  { %51 = dma.hbm_to_vmem [thread:$0]  %s44_s7, 2048, %s46_s8, [#allocation6], %s271_s26, %s271_s26, %s272_s27  }
   0xb   :  { %264 = dma.done.wait [#allocation3], 32  }
   0xc   :  { %265 = vsyncadd [#allocation3], 4294967264 }
   0xd   :  { %266 = dma.done.wait [#allocation6], 2560  }
   0xe   :  { %267 = vsyncadd [#allocation6], 4294964736  ;;  %v70_v0 = vld [vmem:[#allocation5 + $0x18] sm:$0xff]  ;;  %v69_v1 = vld [vmem:[#allocation5 + $0x10] sm:$0xff]  ;;  %vm75_vm0 = vcmask 261120   ;;  %s275_s11 = smov [#allocation8]  }
   0xf   :  { %91 = vmatpush.msra.mxu0 %v70_v0  ;;  %v115_v2 = vld [vmem:[#allocation7 + $0x78] sm:$0xff]  ;;  %v68_v3 = vld [vmem:[#allocation5 + $0x8] sm:$0xff]  ;;  %v114_v4 = vld [vmem:[#allocation7 + $0x70] sm:$0xff]  ;;  %s146_s12 = sshll.u32 %s275_s11, 4  ;;  %s148_s15 = sshll.u32 %s329_s5, 4  ;;  %s147_s12 = int_to_ptr.vmem [resolvable:$true] %s146_s12  ;;  %s149_s15 = int_to_ptr.hbm [resolvable:$true] %s148_s15 }
  0x10   :  { %120 = vmatpush.msra.mxu1 %v115_v2  ;;  %v113_v5 = vld [vmem:[#allocation7 + $0x68] sm:$0xff]  ;;  %v67_v6 = vld [vmem:[#allocation5] sm:$0xff]  ;;  %v66_v7 = vld [vmem:[#allocation2] sm:$0x3] }
  0x11   :  { %92 = vmatpush.msra.mxu0 %v69_v1  ;;  %v112_v8 = vld [vmem:[#allocation7 + $0x60] sm:$0xff]  ;;  %v111_v9 = vld [vmem:[#allocation7 + $0x58] sm:$0xff]  ;;  %v110_v10 = vld [vmem:[#allocation7 + $0x50] sm:$0xff] }
  0x12   :  { %121 = vmatpush.msra.mxu1 %v114_v4  ;;  %v109_v11 = vld [vmem:[#allocation7 + $0x48] sm:$0xff]  ;;  %v108_v12 = vld [vmem:[#allocation7 + $0x40] sm:$0xff]  ;;  %v107_v13 = vld [vmem:[#allocation7 + $0x38] sm:$0xff] }
  0x13   :  { %93 = vmatpush.msra.mxu0 %v68_v3  ;;  %v106_v14 = vld [vmem:[#allocation7 + $0x30] sm:$0xff]  ;;  %v105_v15 = vld [vmem:[#allocation7 + $0x28] sm:$0xff]  ;;  %v104_v16 = vld [vmem:[#allocation7 + $0x20] sm:$0xff] }
  0x14   :  { %122 = vmatpush.msra.mxu1 %v113_v5  ;;  %v103_v17 = vld [vmem:[#allocation7 + $0x18] sm:$0xff]  ;;  %v102_v18 = vld [vmem:[#allocation7 + $0x10] sm:$0xff]  ;;  %v101_v19 = vld [vmem:[#allocation7 + $0x8] sm:$0xff] }
  0x15   :  { %94 = vmatpush.msra.mxu0 %v67_v6  ;;  %v100_v20 = vld [vmem:[#allocation7] sm:$0xff]  ;;  %v166_v21 = vld [vmem:[%s326_s2] ss:$0 sm:$0xff] }
  0x16   :  { %159 = vmatmul.msk.f32.vlgmr.msra.gmra.mxu0 %vm75_vm0, %v66_v7  ;;  %123 = vmatpush.msra.mxu1 %v112_v8  ;;  %v167_v25 = vld [vmem:[%s328_s4] ss:$0 sm:$0xff] }
  0x18   :  { %124 = vmatpush.msra.mxu1 %v111_v9 }
  0x1a   :  { %125 = vmatpush.msra.mxu1 %v110_v10 }
  0x1c   :  { %126 = vmatpush.msra.mxu1 %v109_v11 }
  0x1e   :  { %127 = vmatpush.msra.mxu1 %v108_v12 }
  0x20   :  { %128 = vmatpush.msra.mxu1 %v107_v13 }
  0x22   :  { %129 = vmatpush.msra.mxu1 %v106_v14 }
  0x24   :  { %130 = vmatpush.msra.mxu1 %v105_v15 }
  0x26   :  { %131 = vmatpush.msra.mxu1 %v104_v16 }
  0x28   :  { %132 = vmatpush.msra.mxu1 %v103_v17 }
  0x2a   :  { %133 = vmatpush.msra.mxu1 %v102_v18 }
  0x2c   :  { %134 = vmatpush.msra.mxu1 %v101_v19 }
  0x2e   :  { %135 = vmatpush.msra.mxu1 %v100_v20 }
  0x93   :  { %v96_v22 = vpop.f32.mrf.mxu0 }
  0x94   :  { %v97_v23 = vadd.f32 %v166_v21, %v96_v22 }
  0x96   :  { %v99_v24 = vmax.f32 %v97_v23, 0.0 }
  0x98   :  { %136 = vmatmul.f32.vlgmr.msra.gmra.mxu1 %v99_v24 }
 0x115   :  { %v137_v26 = vpop.f32.mrf.mxu1 }
 0x116   :  { %v138_v27 = vadd.f32 %v167_v25, %v137_v26 }
 0x118   :  { %140 = vst [vmem:[#allocation8] sm:$0x3] %v138_v27 }
 0x119   :  { %151 = dma.vmem_to_hbm [thread:$0]  %s147_s12, 32, %s149_s15, [#allocation4]  }
 0x11a   :  { %268 = dma.done.wait [#allocation4], 32  }
 0x11b   :  { %269 = vsyncadd [#allocation4], 4294967264 }
 0x11c   :  { %156 = vsyncpa [#allocation3], 1 }
 0x11d   :  { %157 = vsyncpa [#allocation6], 1 }
 0x11e   :  { %158 = vsyncpa [#allocation4], 1 }

</bundles_post_ra>
